<compile_context>
chip_gen: v6e
topology: v6e:2x2x1
jax: 0.10.0
libtpu: 0.0.40
codegen_flags: <defaults>
</compile_context>

<pallas_src>
import jax
import jax.numpy as jnp
from jax import lax
from jax.experimental import pallas as pl
from jax.experimental.pallas import tpu as pltpu

LANES = 128
ACC_ROWS = 32                        # accumulator block rows (4 f32 vregs/stream)
TARGET_TILE_BYTES = 2 * 1024 * 1024  # per input buffer, per grid step
MIN_SPLIT_BLOCKS = 8                 # only split across cores with enough steps


def _cdiv(a, b):
    return -(-a // b)


def _round_up(a, b):
    return _cdiv(a, b) * b


def _make_kernel(tile_rows: int, inner_steps: int, rows_total: int):
    """Kernel body with static tile geometry / element extent baked in."""
    num_chunks = tile_rows // ACC_ROWS
    unroll = min(8, num_chunks)

    def kernel(p_ref, t_ref, pt_out, p_out, t_out):
        s = pl.program_id(0)   # parallel (core) split index
        j = pl.program_id(1)   # sequential reduction step within the split

        # Zero this split's resident (32,128) accumulators on its first step.
        @pl.when(j == 0)
        def _():
            pt_out[...] = jnp.zeros_like(pt_out)
            p_out[...] = jnp.zeros_like(p_out)
            t_out[...] = jnp.zeros_like(t_out)

        block_idx = s * inner_steps + j          # logical (unclamped) block
        block_row0 = block_idx * tile_rows       # first logical row of block
        zeros = jnp.zeros((ACC_ROWS, LANES), jnp.float32)

        def run(body):
            # Chunked, vreg-resident partial sums; single RMW of the VMEM
            # accumulators per grid step.
            s_pt, s_p, s_t = lax.fori_loop(
                0, num_chunks, body, (zeros, zeros, zeros), unroll=unroll)
            pt_out[...] += s_pt
            p_out[...] += s_p
            t_out[...] += s_t

        # Full block: every row of the tile is real (or zero lane-pad) data.
        full = (block_idx + 1) * tile_rows <= rows_total

        @pl.when(full)
        def _():
            def body(c, carry):
                s_pt, s_p, s_t = carry
                r0 = pl.multiple_of(c * ACC_ROWS, ACC_ROWS)
                pf = p_ref[pl.ds(r0, ACC_ROWS), :].astype(jnp.float32)
                tf = t_ref[pl.ds(r0, ACC_ROWS), :].astype(jnp.float32)
                return (s_pt + pf * tf, s_p + pf, s_t + tf)
            run(body)

        @pl.when(jnp.logical_not(full))
        def _():
            # Ragged tail block (or clamped duplicate): mask whole rows whose
            # logical row index is past the real row count.  Lane padding is
            # zero-filled in the wrapper, so it needs no mask.  Mask is applied
            # BEFORE the multiply so OOB garbage (incl. NaN) contributes 0.
            row_iota = lax.broadcasted_iota(jnp.int32, (ACC_ROWS, LANES), 0)

            def body(c, carry):
                s_pt, s_p, s_t = carry
                r0 = pl.multiple_of(c * ACC_ROWS, ACC_ROWS)
                valid = (block_row0 + r0 + row_iota) < rows_total
                pf = jnp.where(valid,
                               p_ref[pl.ds(r0, ACC_ROWS), :].astype(jnp.float32),
                               0.0)
                tf = jnp.where(valid,
                               t_ref[pl.ds(r0, ACC_ROWS), :].astype(jnp.float32),
                               0.0)
                return (s_pt + pf * tf, s_p + pf, s_t + tf)
            run(body)

    return kernel


def binary_tversky_focal_loss(predict, target, *, smooth=1.0, alpha=0.7, gamma=1.33):
    """JAX/Pallas equivalent of BinaryTverskyFocalLoss.forward (returns a scalar)."""
    assert predict.shape[0] == target.shape[0], "predict & target batch size do not match"
    beta = 1.0 - alpha

    if target.dtype == jnp.bool_:
        target = target.astype(predict.dtype)

    # Flatten in native dtype (contiguous reshape; no wrapper-side upcast copy).
    p_flat = jnp.reshape(predict, (-1,))
    t_flat = jnp.reshape(target, (-1,))
    n = p_flat.shape[0]

    # Tile sizing: ~2 MiB per input buffer per step, dtype-scaled
    # (f32 -> 4096 rows, bf16 -> 8192 rows), rounded to the accumulator chunk.
    itemsize = max(jnp.dtype(p_flat.dtype).itemsize, jnp.dtype(t_flat.dtype).itemsize)
    max_tile_rows = max(
        ACC_ROWS,
        (TARGET_TILE_BYTES // (itemsize * LANES)) // ACC_ROWS * ACC_ROWS,
    )

    rows = _cdiv(n, LANES)
    if rows >= max_tile_rows:
        tile_rows = max_tile_rows
        rows_padded = rows            # only lane-align; ragged tail masked in-kernel
    else:
        tile_rows = _round_up(max(rows, 1), ACC_ROWS)
        rows_padded = tile_rows       # single full block, no masking needed

    # Zero-pad only to the lane-major [rows_padded, 128] shape (zeros contribute
    # 0 to all three sums, so no in-kernel lane masking is required).
    padded_len = rows_padded * LANES
    pad = padded_len - n
    if pad:
        p_flat = jnp.pad(p_flat, (0, pad))
        t_flat = jnp.pad(t_flat, (0, pad))

    p2d = p_flat.reshape(rows_padded, LANES)
    t2d = t_flat.reshape(rows_padded, LANES)

    blocks = _cdiv(rows_padded, tile_rows)

    # Split the reduction range across TensorCores only on dual-TC parts (v7x)
    # and only when there are enough steps to amortize pipeline warm-up.
    nsplit = 1
    if blocks >= MIN_SPLIT_BLOCKS:
        try:
            kind = jax.devices()[0].device_kind.lower()
        except Exception:
            kind = ""
        if "v7" in kind:
            nsplit = 2
    inner = _cdiv(blocks, nsplit)

    if nsplit * inner == blocks:
        def in_map(s, j):
            return (s * inner + j, 0)
    else:
        # Clamp out-of-range duplicate reads to the last real block; their
        # logical row indices are >= rows_padded, so the in-kernel mask zeroes them.
        last = blocks - 1

        def in_map(s, j):
            return (jnp.minimum(s * inner + j, last), 0)

    out_spec = pl.BlockSpec((None, ACC_ROWS, LANES), lambda s, j: (s, 0, 0))

    kernel = _make_kernel(tile_rows, inner, rows_padded)
    acc_shape = jax.ShapeDtypeStruct((nsplit, ACC_ROWS, LANES), jnp.float32)

    pt_part, p_part, t_part = pl.pallas_call(
        kernel,
        out_shape=(acc_shape, acc_shape, acc_shape),
        grid_spec=pltpu.PrefetchScalarGridSpec(
            num_scalar_prefetch=0,
            grid=(nsplit, inner),
            in_specs=[
                pl.BlockSpec((tile_rows, LANES), in_map),
                pl.BlockSpec((tile_rows, LANES), in_map),
            ],
            out_specs=(out_spec, out_spec, out_spec),
        ),
        compiler_params=pltpu.CompilerParams(
            dimension_semantics=("parallel", "arbitrary"),
        ),
    )(p2d, t2d)

    # Tiny epilogue: one cross-lane reduction + focal Tversky formula.
    tp = jnp.sum(pt_part)                 # sum(p * t)
    sp = jnp.sum(p_part)                  # sum(p)
    st = jnp.sum(t_part)                  # sum(t)
    fn_sum = st - tp                      # sum((1 - p) * t)
    fp_sum = sp - tp                      # sum(p * (1 - t))
    num = tp + smooth
    den = tp + alpha * fn_sum + beta * fp_sum + smooth
    base = jnp.maximum(1.0 - num / den, 0.0)   # guard fp rounding -> NaN in pow
    return jnp.power(base, 1.0 / gamma)


def _reference_loss(predict, target, *, smooth=1.0, alpha=0.7, gamma=1.33):
    beta = 1.0 - alpha
    p = jnp.reshape(predict, (-1,)).astype(jnp.float32)
    t = jnp.reshape(target, (-1,)).astype(jnp.float32)
    num = jnp.sum(p * t) + smooth
    den = jnp.sum(p * t) + alpha * jnp.sum((1 - p) * t) + beta * jnp.sum(p * (1 - t)) + smooth
    return jnp.power(1.0 - num / den, 1.0 / gamma)


if __name__ == "__main__":
    key = jax.random.PRNGKey(0)
    k1, k2 = jax.random.split(key)

    # predict: [N, C, H, W] probabilities; target: same shape, binary {0, 1}
    N, C, H, W = 2, 4, 16, 16
    predict = jax.nn.sigmoid(jax.random.normal(k1, (N, C, H, W), dtype=jnp.float32))
    target = jax.random.bernoulli(k2, 0.3, (N, C, H, W)).astype(jnp.float32)

    loss = binary_tversky_focal_loss(predict, target)
    loss = jax.block_until_ready(loss)

    ref = jax.block_until_ready(_reference_loss(predict, target))
    assert jnp.allclose(loss, ref, rtol=1e-5, atol=1e-6), (loss, ref)

    print("KERNEL_OK")
</pallas_src>

<mosaic_0001>
module attributes {stable_mosaic.version = 11 : i64} {
  func.func @kernel(%arg0: i32, %arg1: i32, %arg2: memref<32x128xf32, #tpu.memory_space<vmem>>, %arg3: memref<32x128xf32, #tpu.memory_space<vmem>>, %arg4: memref<1x32x128xf32, #tpu.memory_space<vmem>>, %arg5: memref<1x32x128xf32, #tpu.memory_space<vmem>>, %arg6: memref<1x32x128xf32, #tpu.memory_space<vmem>>) attributes {dimension_semantics = [#tpu.dimension_semantics<parallel>, #tpu.dimension_semantics<arbitrary>], iteration_bounds = array<i64: 1, 1>, scalar_prefetch = 0 : i64, scratch_operands = 0 : i64, tpu.core_type = #tpu.core_type<tc>, window_params = [{transform_indices = @transform_0, window_bounds = array<i64: 32, 128>}, {transform_indices = @transform_1, window_bounds = array<i64: 32, 128>}, {transform_indices = @transform_2, window_bounds = array<i64: 1, 32, 128>}, {transform_indices = @transform_3, window_bounds = array<i64: 1, 32, 128>}, {transform_indices = @transform_4, window_bounds = array<i64: 1, 32, 128>}]} {
    %c0_i32 = arith.constant 0 : i32
    %0 = arith.cmpi eq, %arg1, %c0_i32 : i32
    %1 = arith.extui %0 : i1 to i32
    %c0_i32_0 = arith.constant 0 : i32
    %2 = arith.cmpi ne, %1, %c0_i32_0 : i32
    scf.if %2 {
      %cst_6 = arith.constant 0.000000e+00 : f32
      %15 = vector.broadcast %cst_6 : f32 to vector<32x128xf32>
      %c0 = arith.constant 0 : index
      %c0_7 = arith.constant 0 : index
      %c0_8 = arith.constant 0 : index
      %16 = vector.load %arg4[%c0, %c0_7, %c0_8] : memref<1x32x128xf32, #tpu.memory_space<vmem>>, vector<1x32x128xf32>
      %17 = vector.shape_cast %16 : vector<1x32x128xf32> to vector<32x128xf32>
      %18 = vector.shape_cast %15 : vector<32x128xf32> to vector<1x32x128xf32>
      tpu.vector_store %arg4[%c0, %c0_7, %c0_8], %18 {strides = array<i32>} : memref<1x32x128xf32, #tpu.memory_space<vmem>>, vector<1x32x128xf32>,
      %cst_9 = arith.constant 0.000000e+00 : f32
      %19 = vector.broadcast %cst_9 : f32 to vector<32x128xf32>
      %c0_10 = arith.constant 0 : index
      %c0_11 = arith.constant 0 : index
      %c0_12 = arith.constant 0 : index
      %20 = vector.load %arg5[%c0_10, %c0_11, %c0_12] : memref<1x32x128xf32, #tpu.memory_space<vmem>>, vector<1x32x128xf32>
      %21 = vector.shape_cast %20 : vector<1x32x128xf32> to vector<32x128xf32>
      %22 = vector.shape_cast %19 : vector<32x128xf32> to vector<1x32x128xf32>
      tpu.vector_store %arg5[%c0_10, %c0_11, %c0_12], %22 {strides = array<i32>} : memref<1x32x128xf32, #tpu.memory_space<vmem>>, vector<1x32x128xf32>,
      %cst_13 = arith.constant 0.000000e+00 : f32
      %23 = vector.broadcast %cst_13 : f32 to vector<32x128xf32>
      %c0_14 = arith.constant 0 : index
      %c0_15 = arith.constant 0 : index
      %c0_16 = arith.constant 0 : index
      %24 = vector.load %arg6[%c0_14, %c0_15, %c0_16] : memref<1x32x128xf32, #tpu.memory_space<vmem>>, vector<1x32x128xf32>
      %25 = vector.shape_cast %24 : vector<1x32x128xf32> to vector<32x128xf32>
      %26 = vector.shape_cast %23 : vector<32x128xf32> to vector<1x32x128xf32>
      tpu.vector_store %arg6[%c0_14, %c0_15, %c0_16], %26 {strides = array<i32>} : memref<1x32x128xf32, #tpu.memory_space<vmem>>, vector<1x32x128xf32>,
    } else {
    }
    %c1_i32 = arith.constant 1 : i32
    %3 = arith.muli %arg0, %c1_i32 : i32
    %4 = arith.addi %3, %arg1 : i32
    %c32_i32 = arith.constant 32 : i32
    %5 = arith.muli %4, %c32_i32 : i32
    %cst = arith.constant 0.000000e+00 : f32
    %6 = vector.broadcast %cst : f32 to vector<32x128xf32>
    %c1_i32_1 = arith.constant 1 : i32
    %7 = arith.addi %4, %c1_i32_1 : i32
    %c32_i32_2 = arith.constant 32 : i32
    %8 = arith.muli %7, %c32_i32_2 : i32
    %c32_i32_3 = arith.constant 32 : i32
    %9 = arith.cmpi sle, %8, %c32_i32_3 : i32
    %10 = arith.extui %9 : i1 to i32
    %c0_i32_4 = arith.constant 0 : i32
    %11 = arith.cmpi ne, %10, %c0_i32_4 : i32
    scf.if %11 {
      %c0_i32_6 = arith.constant 0 : i32
      %c32_i32_7 = arith.constant 32 : i32
      %15 = arith.muli %c0_i32_6, %c32_i32_7 : i32
      %16 = tpu.assume_multiple %15, 32 : i32
      %17 = arith.index_cast %16 : i32 to index
      %c0 = arith.constant 0 : index
      %18 = vector.load %arg2[%17, %c0] : memref<32x128xf32, #tpu.memory_space<vmem>>, vector<32x128xf32>
      %19 = arith.index_cast %16 : i32 to index
      %c0_8 = arith.constant 0 : index
      %20 = vector.load %arg3[%19, %c0_8] : memref<32x128xf32, #tpu.memory_space<vmem>>, vector<32x128xf32>
      %21 = arith.mulf %18, %20 : vector<32x128xf32>
      %22 = arith.addf %6, %21 : vector<32x128xf32>
      %23 = arith.addf %6, %18 : vector<32x128xf32>
      %24 = arith.addf %6, %20 : vector<32x128xf32>
      %c1_i32_9 = arith.constant 1 : i32
      %c0_10 = arith.constant 0 : index
      %c0_11 = arith.constant 0 : index
      %c0_12 = arith.constant 0 : index
      %25 = vector.load %arg4[%c0_10, %c0_11, %c0_12] : memref<1x32x128xf32, #tpu.memory_space<vmem>>, vector<1x32x128xf32>
      %26 = vector.shape_cast %25 : vector<1x32x128xf32> to vector<32x128xf32>
      %27 = arith.addf %26, %22 : vector<32x128xf32>
      %c0_13 = arith.constant 0 : index
      %c0_14 = arith.constant 0 : index
      %c0_15 = arith.constant 0 : index
      %28 = vector.load %arg4[%c0_13, %c0_14, %c0_15] : memref<1x32x128xf32, #tpu.memory_space<vmem>>, vector<1x32x128xf32>
      %29 = vector.shape_cast %28 : vector<1x32x128xf32> to vector<32x128xf32>
      %30 = vector.shape_cast %27 : vector<32x128xf32> to vector<1x32x128xf32>
      tpu.vector_store %arg4[%c0_13, %c0_14, %c0_15], %30 {strides = array<i32>} : memref<1x32x128xf32, #tpu.memory_space<vmem>>, vector<1x32x128xf32>,
      %c0_16 = arith.constant 0 : index
      %c0_17 = arith.constant 0 : index
      %c0_18 = arith.constant 0 : index
      %31 = vector.load %arg5[%c0_16, %c0_17, %c0_18] : memref<1x32x128xf32, #tpu.memory_space<vmem>>, vector<1x32x128xf32>
      %32 = vector.shape_cast %31 : vector<1x32x128xf32> to vector<32x128xf32>
      %33 = arith.addf %32, %23 : vector<32x128xf32>
      %c0_19 = arith.constant 0 : index
      %c0_20 = arith.constant 0 : index
      %c0_21 = arith.constant 0 : index
      %34 = vector.load %arg5[%c0_19, %c0_20, %c0_21] : memref<1x32x128xf32, #tpu.memory_space<vmem>>, vector<1x32x128xf32>
      %35 = vector.shape_cast %34 : vector<1x32x128xf32> to vector<32x128xf32>
      %36 = vector.shape_cast %33 : vector<32x128xf32> to vector<1x32x128xf32>
      tpu.vector_store %arg5[%c0_19, %c0_20, %c0_21], %36 {strides = array<i32>} : memref<1x32x128xf32, #tpu.memory_space<vmem>>, vector<1x32x128xf32>,
      %c0_22 = arith.constant 0 : index
      %c0_23 = arith.constant 0 : index
      %c0_24 = arith.constant 0 : index
      %37 = vector.load %arg6[%c0_22, %c0_23, %c0_24] : memref<1x32x128xf32, #tpu.memory_space<vmem>>, vector<1x32x128xf32>
      %38 = vector.shape_cast %37 : vector<1x32x128xf32> to vector<32x128xf32>
      %39 = arith.addf %38, %24 : vector<32x128xf32>
      %c0_25 = arith.constant 0 : index
      %c0_26 = arith.constant 0 : index
      %c0_27 = arith.constant 0 : index
      %40 = vector.load %arg6[%c0_25, %c0_26, %c0_27] : memref<1x32x128xf32, #tpu.memory_space<vmem>>, vector<1x32x128xf32>
      %41 = vector.shape_cast %40 : vector<1x32x128xf32> to vector<32x128xf32>
      %42 = vector.shape_cast %39 : vector<32x128xf32> to vector<1x32x128xf32>
      tpu.vector_store %arg6[%c0_25, %c0_26, %c0_27], %42 {strides = array<i32>} : memref<1x32x128xf32, #tpu.memory_space<vmem>>, vector<1x32x128xf32>,
    } else {
    }
    %true = arith.constant true
    %12 = arith.xori %9, %true : i1
    %13 = arith.extui %12 : i1 to i32
    %c0_i32_5 = arith.constant 0 : i32
    %14 = arith.cmpi ne, %13, %c0_i32_5 : i32
    scf.if %14 {
      %15 = tpu.iota {dimensions = array<i32: 0>} : vector<32x128xi32>
      %c0_i32_6 = arith.constant 0 : i32
      %c32_i32_7 = arith.constant 32 : i32
      %16 = arith.muli %c0_i32_6, %c32_i32_7 : i32
      %17 = tpu.assume_multiple %16, 32 : i32
      %18 = arith.addi %5, %17 : i32
      %19 = vector.broadcast %18 : i32 to vector<32x128xi32>
      %20 = arith.addi %19, %15 : vector<32x128xi32>
      %c32_i32_8 = arith.constant 32 : i32
      %21 = vector.broadcast %c32_i32_8 : i32 to vector<32x128xi32>
      %22 = arith.cmpi slt, %20, %21 : vector<32x128xi32>
      %23 = arith.index_cast %17 : i32 to index
      %c0 = arith.constant 0 : index
      %24 = vector.load %arg2[%23, %c0] : memref<32x128xf32, #tpu.memory_space<vmem>>, vector<32x128xf32>
      %cst_9 = arith.constant 0.000000e+00 : f32
      %25 = vector.broadcast %cst_9 : f32 to vector<32x128xf32>
      %26 = arith.select %22, %24, %25 : vector<32x128xi1>, vector<32x128xf32>
      %27 = arith.index_cast %17 : i32 to index
      %c0_10 = arith.constant 0 : index
      %28 = vector.load %arg3[%27, %c0_10] : memref<32x128xf32, #tpu.memory_space<vmem>>, vector<32x128xf32>
      %cst_11 = arith.constant 0.000000e+00 : f32
      %29 = vector.broadcast %cst_11 : f32 to vector<32x128xf32>
      %30 = arith.select %22, %28, %29 : vector<32x128xi1>, vector<32x128xf32>
      %31 = arith.mulf %26, %30 : vector<32x128xf32>
      %32 = arith.addf %6, %31 : vector<32x128xf32>
      %33 = arith.addf %6, %26 : vector<32x128xf32>
      %34 = arith.addf %6, %30 : vector<32x128xf32>
      %c1_i32_12 = arith.constant 1 : i32
      %c0_13 = arith.constant 0 : index
      %c0_14 = arith.constant 0 : index
      %c0_15 = arith.constant 0 : index
      %35 = vector.load %arg4[%c0_13, %c0_14, %c0_15] : memref<1x32x128xf32, #tpu.memory_space<vmem>>, vector<1x32x128xf32>
      %36 = vector.shape_cast %35 : vector<1x32x128xf32> to vector<32x128xf32>
      %37 = arith.addf %36, %32 : vector<32x128xf32>
      %c0_16 = arith.constant 0 : index
      %c0_17 = arith.constant 0 : index
      %c0_18 = arith.constant 0 : index
      %38 = vector.load %arg4[%c0_16, %c0_17, %c0_18] : memref<1x32x128xf32, #tpu.memory_space<vmem>>, vector<1x32x128xf32>
      %39 = vector.shape_cast %38 : vector<1x32x128xf32> to vector<32x128xf32>
      %40 = vector.shape_cast %37 : vector<32x128xf32> to vector<1x32x128xf32>
      tpu.vector_store %arg4[%c0_16, %c0_17, %c0_18], %40 {strides = array<i32>} : memref<1x32x128xf32, #tpu.memory_space<vmem>>, vector<1x32x128xf32>,
      %c0_19 = arith.constant 0 : index
      %c0_20 = arith.constant 0 : index
      %c0_21 = arith.constant 0 : index
      %41 = vector.load %arg5[%c0_19, %c0_20, %c0_21] : memref<1x32x128xf32, #tpu.memory_space<vmem>>, vector<1x32x128xf32>
      %42 = vector.shape_cast %41 : vector<1x32x128xf32> to vector<32x128xf32>
      %43 = arith.addf %42, %33 : vector<32x128xf32>
      %c0_22 = arith.constant 0 : index
      %c0_23 = arith.constant 0 : index
      %c0_24 = arith.constant 0 : index
      %44 = vector.load %arg5[%c0_22, %c0_23, %c0_24] : memref<1x32x128xf32, #tpu.memory_space<vmem>>, vector<1x32x128xf32>
      %45 = vector.shape_cast %44 : vector<1x32x128xf32> to vector<32x128xf32>
      %46 = vector.shape_cast %43 : vector<32x128xf32> to vector<1x32x128xf32>
      tpu.vector_store %arg5[%c0_22, %c0_23, %c0_24], %46 {strides = array<i32>} : memref<1x32x128xf32, #tpu.memory_space<vmem>>, vector<1x32x128xf32>,
      %c0_25 = arith.constant 0 : index
      %c0_26 = arith.constant 0 : index
      %c0_27 = arith.constant 0 : index
      %47 = vector.load %arg6[%c0_25, %c0_26, %c0_27] : memref<1x32x128xf32, #tpu.memory_space<vmem>>, vector<1x32x128xf32>
      %48 = vector.shape_cast %47 : vector<1x32x128xf32> to vector<32x128xf32>
      %49 = arith.addf %48, %34 : vector<32x128xf32>
      %c0_28 = arith.constant 0 : index
      %c0_29 = arith.constant 0 : index
      %c0_30 = arith.constant 0 : index
      %50 = vector.load %arg6[%c0_28, %c0_29, %c0_30] : memref<1x32x128xf32, #tpu.memory_space<vmem>>, vector<1x32x128xf32>
      %51 = vector.shape_cast %50 : vector<1x32x128xf32> to vector<32x128xf32>
      %52 = vector.shape_cast %49 : vector<32x128xf32> to vector<1x32x128xf32>
      tpu.vector_store %arg6[%c0_28, %c0_29, %c0_30], %52 {strides = array<i32>} : memref<1x32x128xf32, #tpu.memory_space<vmem>>, vector<1x32x128xf32>,
    } else {
    }
    return
  }
  func.func @transform_0(%arg0: i32, %arg1: i32) -> (i32, i32) {
    %c1_i32 = arith.constant 1 : i32
    %0 = arith.muli %arg0, %c1_i32 : i32
    %1 = arith.addi %0, %arg1 : i32
    %c0_i32 = arith.constant 0 : i32
    %c0_i32_0 = arith.constant 0 : i32
    return %1, %c0_i32 : i32, i32
  }
  func.func @transform_1(%arg0: i32, %arg1: i32) -> (i32, i32) {
    %c1_i32 = arith.constant 1 : i32
    %0 = arith.muli %arg0, %c1_i32 : i32
    %1 = arith.addi %0, %arg1 : i32
    %c0_i32 = arith.constant 0 : i32
    %c0_i32_0 = arith.constant 0 : i32
    return %1, %c0_i32 : i32, i32
  }
  func.func @transform_2(%arg0: i32, %arg1: i32) -> (i32, i32, i32) {
    %c0_i32 = arith.constant 0 : i32
    %c0_i32_0 = arith.constant 0 : i32
    %c0_i32_1 = arith.constant 0 : i32
    return %arg0, %c0_i32, %c0_i32_0 : i32, i32, i32
  }
  func.func @transform_3(%arg0: i32, %arg1: i32) -> (i32, i32, i32) {
    %c0_i32 = arith.constant 0 : i32
    %c0_i32_0 = arith.constant 0 : i32
    %c0_i32_1 = arith.constant 0 : i32
    return %arg0, %c0_i32, %c0_i32_0 : i32, i32, i32
  }
  func.func @transform_4(%arg0: i32, %arg1: i32) -> (i32, i32, i32) {
    %c0_i32 = arith.constant 0 : i32
    %c0_i32_0 = arith.constant 0 : i32
    %c0_i32_1 = arith.constant 0 : i32
    return %arg0, %c0_i32, %c0_i32_0 : i32, i32, i32
  }
}

</mosaic_0001>

<bundles_post_ra>
// kernel: tpu_custom_call.1
= control target key start
LH: loop header
LB: loop body
LE: loop exit
PB: predicated region body
PF: predicated region fallthrough
CT: control target
= control target key end

     0   :  { %10 = vsyncpa [#allocation3], 0  ;;  %s461_s0 = inlined_call_operand.hbm [shape: f32[32,128], index: 0, kind: input, shape index: {}]   ;;  %s462_s1 = inlined_call_operand.hbm [shape: f32[32,128], index: 1, kind: input, shape index: {}]   ;;  %s463_s2 = inlined_call_operand.hbm [shape: f32[1,32,128], index: 2, kind: output, shape index: {0}]   ;;  %s464_s3 = inlined_call_operand.hbm [shape: f32[1,32,128], index: 3, kind: output, shape index: {1}]   ;;  %s465_s4 = inlined_call_operand.hbm [shape: f32[1,32,128], index: 4, kind: output, shape index: {2}]  }
   0x1   :  { %11 = vsyncpa [#allocation6], 0 }
   0x2   :  { %12 = vsyncpa [#allocation4], 0 }
   0x3   :  { %13 = vsyncpa [#allocation9], 0  ;;  %s392_s15 = smov [#allocation2]  }
   0x4   :  { %s23_s16 = sshll.u32 %s392_s15, 4  ;;  %s24_s16 = int_to_ptr.vmem [resolvable:$true] %s23_s16 }
   0x5   :  { %s292_s17 = scalar_lea.vmem %s24_s16, 512  ;;  %p297_p1 = scmp.lt.s32.totalorder %s24_s16, %s24_s16 }
   0x6   :  { %p293_p0 = scmp.ne.s32.totalorder %s24_s16, %s292_s17  ;;  %p298_p2 = scmp.lt.s32.totalorder %s292_s17, %s292_s17 }
   0x8   :  { %p299_p3 = por %p298_p2, %p297_p1 }
   0xa   :  { %p300_p4 = pnand %p299_p3, %p293_p0 }
   0xc   :  { %303 = shalt.err (!%p300_p4)
}
   0xd   :  { %s393_s18 = smov 128   ;;  %s394_s19 = smov 8  }
   0xe   :  { %29 = dma.hbm_to_vmem [thread:$0]  %s461_s0, 512, %s24_s16, [#allocation3], %s393_s18, %s393_s18, %s394_s19  }
   0xf   :  { %s395_s22 = smov [#allocation5]  }
  0x10   :  { %s39_s23 = sshll.u32 %s395_s22, 4  ;;  %s40_s23 = int_to_ptr.vmem [resolvable:$true] %s39_s23 }
  0x11   :  { %s312_s24 = scalar_lea.vmem %s40_s23, 512  ;;  %p317_p6 = scmp.lt.s32.totalorder %s40_s23, %s40_s23 }
  0x12   :  { %p313_p5 = scmp.ne.s32.totalorder %s40_s23, %s312_s24  ;;  %p318_p7 = scmp.lt.s32.totalorder %s312_s24, %s312_s24 }
  0x14   :  { %p319_p8 = por %p318_p7, %p317_p6 }
  0x16   :  { %p320_p9 = pnand %p319_p8, %p313_p5 }
  0x18   :  { %323 = shalt.err (!%p320_p9)
}
  0x19   :  { %45 = dma.hbm_to_vmem [thread:$0]  %s462_s1, 512, %s40_s23, [#allocation6], %s393_s18, %s393_s18, %s394_s19  }
  0x1a   :  { %384 = dma.done.wait [#allocation3], 512  }
  0x1b   :  { %385 = vsyncadd [#allocation3], 4294966784 }
  0x1c   :  { %386 = dma.done.wait [#allocation6], 512  }
  0x1d   :  { %387 = vsyncadd [#allocation6], 4294966784  ;;  %s396_s0 = smov [#allocation8]   ;;  %v80_v0 = vld [vmem:[#allocation2] sm:$0xff]  ;;  %v81_v1 = vld [vmem:[#allocation2 + $0x8] sm:$0xff]  ;;  %s397_s28 = smov [#allocation7]  }
  0x1e   :  { %s244_s27 = sshll.u32 %s396_s0, 4  ;;  %v82_v2 = vld [vmem:[#allocation2 + $0x10] sm:$0xff]  ;;  %v83_v3 = vld [vmem:[#allocation2 + $0x18] sm:$0xff]  ;;  %v84_v4 = vld [vmem:[#allocation5] sm:$0xff]  ;;  %s232_s29 = sshll.u32 %s397_s28, 4  ;;  %124 = vst [vmem:[#allocation8] sm:$0xff] %v80_v0  ;;  %s245_s27 = int_to_ptr.vmem [resolvable:$true] %s244_s27  ;;  %s436_s29 = int_to_ptr.vmem [resolvable:$true] %s232_s29 }
  0x1f   :  { %v85_v5 = vld [vmem:[#allocation5 + $0x8] sm:$0xff]  ;;  %s398_s30 = smov [#allocation10]   ;;  %v88_v6 = vmul.f32 %v84_v4, %v80_v0  ;;  %v86_v8 = vld [vmem:[#allocation5 + $0x10] sm:$0xff]  ;;  %v87_v9 = vld [vmem:[#allocation5 + $0x18] sm:$0xff]  ;;  %125 = vst [vmem:[#allocation8 + $0x8] sm:$0xff] %v81_v1  ;;  %s324_s1 = scalar_lea.vmem %s245_s27, 512 }
  0x20   :  { %s256_s5 = sshll.u32 %s398_s30, 4  ;;  %v89_v7 = vmul.f32 %v85_v5, %v81_v1  ;;  %126 = vst [vmem:[#allocation8 + $0x10] sm:$0xff] %v82_v2  ;;  %v90_v10 = vmul.f32 %v86_v8, %v82_v2  ;;  %v91_v11 = vmul.f32 %v87_v9, %v83_v3  ;;  %127 = vst [vmem:[#allocation8 + $0x18] sm:$0xff] %v83_v3  ;;  %p325_p10 = scmp.ne.s32.totalorder %s245_s27, %s324_s1  ;;  %s257_s5 = int_to_ptr.vmem [resolvable:$true] %s256_s5 }
  0x21   :  { %136 = vst [vmem:[#allocation10] sm:$0xff] %v84_v4  ;;  %137 = vst [vmem:[#allocation10 + $0x8] sm:$0xff] %v85_v5  ;;  %p329_p11 = scmp.lt.s32.totalorder %s245_s27, %s245_s27  ;;  %p330_p12 = scmp.lt.s32.totalorder %s324_s1, %s324_s1 }
  0x22   :  { %138 = vst [vmem:[#allocation10 + $0x10] sm:$0xff] %v86_v8 }
  0x23   :  { %p331_p13 = por %p330_p12, %p329_p11 }
  0x25   :  { %p332_p0 = pnand %p331_p13, %p325_p10 }
  0x27   :  { %335 = shalt.err (!%p332_p0)
}
  0x28   :  { %250 = dma.vmem_to_hbm [thread:$0]  %s245_s27, 512, %s464_s3, [#allocation9], %s393_s18, %s393_s18, %s394_s19   ;;  %112 = vst [vmem:[#allocation7] sm:$0xff] %v88_v6  ;;  %113 = vst [vmem:[#allocation7 + $0x8] sm:$0xff] %v89_v7 }
  0x29   :  { %139 = vst [vmem:[#allocation10 + $0x18] sm:$0xff] %v87_v9  ;;  %114 = vst [vmem:[#allocation7 + $0x10] sm:$0xff] %v90_v10  ;;  %s344_s8 = scalar_lea.vmem %s257_s5, 512  ;;  %p349_p2 = scmp.lt.s32.totalorder %s257_s5, %s257_s5 }
  0x2a   :  { %115 = vst [vmem:[#allocation7 + $0x18] sm:$0xff] %v91_v11  ;;  %p345_p1 = scmp.ne.s32.totalorder %s257_s5, %s344_s8  ;;  %p350_p3 = scmp.lt.s32.totalorder %s344_s8, %s344_s8 }
  0x2c   :  { %p351_p4 = por %p350_p3, %p349_p2 }
  0x2e   :  { %p352_p5 = pnand %p351_p4, %p345_p1 }
  0x30   :  { %355 = shalt.err (!%p352_p5)
}
  0x31   :  { %262 = dma.vmem_to_hbm [thread:$0]  %s257_s5, 512, %s465_s4, [#allocation9], %s393_s18, %s393_s18, %s394_s19  }
  0x32   :  { %s364_s3 = scalar_lea.vmem %s436_s29, 512  ;;  %p369_p7 = scmp.lt.s32.totalorder %s436_s29, %s436_s29 }
  0x33   :  { %p365_p6 = scmp.ne.s32.totalorder %s436_s29, %s364_s3  ;;  %p370_p8 = scmp.lt.s32.totalorder %s364_s3, %s364_s3 }
  0x35   :  { %p371_p9 = por %p370_p8, %p369_p7 }
  0x37   :  { %p372_p10 = pnand %p371_p9, %p365_p6 }
  0x39   :  { %375 = shalt.err (!%p372_p10)
}
  0x3a   :  { %238 = dma.vmem_to_hbm [thread:$0]  %s436_s29, 512, %s463_s2, [#allocation4], %s393_s18, %s393_s18, %s394_s19  }
  0x3b   :  { %388 = dma.done.wait [#allocation4], 512  }
  0x3c   :  { %389 = vsyncadd [#allocation4], 4294966784 }
  0x3d   :  { %390 = dma.done.wait [#allocation9], 1024  }
  0x3e   :  { %391 = vsyncadd [#allocation9], 4294966272 }
  0x3f   :  { %272 = vsyncpa [#allocation3], 1 }
  0x40   :  { %273 = vsyncpa [#allocation6], 1 }
  0x41   :  { %274 = vsyncpa [#allocation4], 1 }
  0x42   :  { %275 = vsyncpa [#allocation9], 1 }

</bundles_post_ra>
